<compile_context>
chip_gen: v5e
topology: v5e:2x2
jax: 0.10.0
libtpu: 0.0.40
codegen_flags: <defaults>
</compile_context>

<pallas_src>
import functools

import jax
import jax.numpy as jnp
from jax import lax
from jax.experimental import pallas as pl
from jax.experimental.pallas import tpu as pltpu


def _attention_kernel(x_ref, wqkv_ref, wo_ref, bo_ref,
                      y_ref, attn_ref, acc_ref, *, scale, d_head):
    # x_ref:    (1, N, dim)           rows of batch b (resident across the head axis)
    # wqkv_ref: (1, dim, 3*d_head)    per-head fused [Wq | Wk | Wv] (already transposed)
    # wo_ref:   (1, d_head, dim)      per-head slice of the output projection weight
    # bo_ref:   (1, dim)              output projection bias
    # y_ref:    (1, N, dim)           projected output (resident across the head axis)
    # attn_ref: (1, 1, N, N)          softmax attention weights for (b, h)
    # acc_ref:  (N, dim) f32          accumulator for the output projection
    h = pl.program_id(1)

    x = x_ref[0]                                                         # (N, dim)

    # Fused QKV projection for this head: one wide matmul.
    qkv = jnp.dot(x, wqkv_ref[0], preferred_element_type=jnp.float32)    # (N, 3*d_head)
    q = qkv[:, 0 * d_head:1 * d_head] * scale
    k = qkv[:, 1 * d_head:2 * d_head]
    v = qkv[:, 2 * d_head:3 * d_head]

    # scores = (q*scale) @ k^T, contraction on the last dim of both operands.
    dots = lax.dot_general(q, k, (((1,), (1,)), ((), ())),
                           preferred_element_type=jnp.float32)            # (N, N)
    m = jnp.max(dots, axis=-1, keepdims=True)
    p = jnp.exp(dots - m)
    attn = p / jnp.sum(p, axis=-1, keepdims=True)                         # softmax, f32
    attn_ref[0, 0] = attn.astype(attn_ref.dtype)
    # Dropout(p=0.0) on the attention weights -> identity.

    head_out = jnp.dot(attn, v, preferred_element_type=jnp.float32)       # (N, d_head)
    contrib = jnp.dot(head_out.astype(wo_ref.dtype), wo_ref[0],
                      preferred_element_type=jnp.float32)                 # (N, dim)

    @pl.when(h == 0)
    def _():
        acc_ref[...] = jnp.zeros_like(acc_ref)

    acc_ref[...] += contrib

    @pl.when(h == pl.num_programs(1) - 1)
    def _():
        # to_out Linear bias, then Dropout(p=0.0) -> identity.
        y_ref[0] = (acc_ref[...] + bo_ref[...]).astype(y_ref.dtype)


@functools.partial(jax.jit, static_argnames=("heads",))
def attention_forward(x, w_qkv, w_out, b_out, *, heads):
    """Forward pass of the PyTorch Attention module.

    x:      (B, N, dim)
    w_qkv:  (3*inner, dim)   nn.Linear weight of to_qkv (bias=False)
    w_out:  (dim, inner)     nn.Linear weight of to_out[0]
    b_out:  (dim,)           its bias
    Returns (y, attention): y (B, N, dim), attention (B, heads, N, N).
    (For the module's project_out=False case, pass w_out=I and b_out=0.)
    """
    B, N, dim = x.shape
    inner = w_qkv.shape[0] // 3
    d_head = inner // heads
    scale = float(d_head) ** -0.5

    # Fused per-head QKV weight: (heads, dim, 3*d_head), columns laid out [q | k | v].
    wqkv_t = w_qkv.T.reshape(dim, 3, heads, d_head)                  # (dim, 3, heads, d_head)
    wqkv_h = wqkv_t.transpose(2, 0, 1, 3).reshape(heads, dim, 3 * d_head)
    # Output projection per head: y = sum_h head_out_h @ wo[h] + b, wo[h]: (d_head, dim).
    wo = w_out.T.reshape(heads, d_head, dim)
    bo = b_out.reshape(1, dim)

    itemsize = jnp.dtype(x.dtype).itemsize
    # VMEM budget: double-buffered blocks + f32 scratch/intermediates + headroom,
    # capped at v7x's 64 MiB physical VMEM.
    blk_bytes = (2 * N * dim + 4 * dim * d_head + dim + N * N) * itemsize
    work_bytes = 4 * N * (6 * d_head + 3 * N + 3 * dim)
    vmem_limit = int(min(max(2 * blk_bytes + work_bytes + (4 << 20), 16 << 20), 64 << 20))

    cost = pl.CostEstimate(
        flops=(2 * B * N * dim * 3 * inner            # qkv projection
               + 4 * B * heads * N * N * d_head       # q@k.T and attn@v
               + 2 * B * N * inner * dim),            # output projection
        transcendentals=B * heads * N * N,            # softmax exp
        bytes_accessed=(x.size + w_qkv.size + w_out.size + b_out.size
                        + B * N * dim + B * heads * N * N) * itemsize,
    )

    kernel = functools.partial(_attention_kernel, scale=scale, d_head=d_head)

    y, attn = pl.pallas_call(
        kernel,
        out_shape=(
            jax.ShapeDtypeStruct((B, N, dim), x.dtype),
            jax.ShapeDtypeStruct((B, heads, N, N), x.dtype),
        ),
        grid_spec=pltpu.PrefetchScalarGridSpec(
            num_scalar_prefetch=0,
            grid=(B, heads),
            in_specs=[
                pl.BlockSpec((1, N, dim), lambda b, h: (b, 0, 0)),            # x (per batch)
                pl.BlockSpec((1, dim, 3 * d_head), lambda b, h: (h, 0, 0)),   # fused Wqkv (per head)
                pl.BlockSpec((1, d_head, dim), lambda b, h: (h, 0, 0)),       # Wo slice (per head)
                pl.BlockSpec((1, dim), lambda b, h: (0, 0)),                  # bias (constant)
            ],
            out_specs=(
                pl.BlockSpec((1, N, dim), lambda b, h: (b, 0, 0)),            # y (resident over h)
                pl.BlockSpec((1, 1, N, N), lambda b, h: (b, h, 0, 0)),        # attention weights
            ),
            scratch_shapes=[pltpu.VMEM((N, dim), jnp.float32)],
        ),
        compiler_params=pltpu.CompilerParams(
            dimension_semantics=("parallel", "arbitrary"),
            vmem_limit_bytes=vmem_limit,
        ),
        cost_estimate=cost,
    )(x, wqkv_h, wo, bo)

    return y, attn


if __name__ == "__main__":
    # Small shapes consistent with the module: x is (batch, seq, dim).
    batch, seq, dim = 2, 8, 32
    heads, dim_head = 4, 16          # project_out=True path (Linear + Dropout(p=0))
    inner = heads * dim_head

    key = jax.random.PRNGKey(0)
    kx, kqkv, kwo, kbo = jax.random.split(key, 4)

    x = jax.random.normal(kx, (batch, seq, dim), dtype=jnp.float32)

    # PyTorch nn.Linear default init bounds (weights kept in PyTorch layout).
    bqkv = 1.0 / (dim ** 0.5)
    bout = 1.0 / (inner ** 0.5)
    w_qkv = jax.random.uniform(kqkv, (3 * inner, dim), minval=-bqkv, maxval=bqkv,
                               dtype=jnp.float32)
    w_out = jax.random.uniform(kwo, (dim, inner), minval=-bout, maxval=bout,
                               dtype=jnp.float32)
    b_out = jax.random.uniform(kbo, (dim,), minval=-bout, maxval=bout,
                               dtype=jnp.float32)

    y, attn = attention_forward(x, w_qkv, w_out, b_out, heads=heads)
    jax.block_until_ready((y, attn))

    # Pure-JAX reference (exact module semantics; dropout p=0 is identity).
    qkv = x @ w_qkv.T
    q, k, v = jnp.split(qkv, 3, axis=-1)

    def to_heads(t):
        return t.reshape(batch, seq, heads, dim_head).transpose(0, 2, 1, 3)

    q, k, v = map(to_heads, (q, k, v))
    dots = jnp.einsum("bhnd,bhmd->bhnm", q, k) * (dim_head ** -0.5)
    attn_expected = jax.nn.softmax(dots, axis=-1)
    out = jnp.einsum("bhnm,bhmd->bhnd", attn_expected, v)
    out = out.transpose(0, 2, 1, 3).reshape(batch, seq, inner)
    y_expected = out @ w_out.T + b_out

    assert jnp.allclose(attn, attn_expected, atol=2e-5, rtol=2e-5), "attention mismatch"
    assert jnp.allclose(y, y_expected, atol=2e-5, rtol=2e-5), "output mismatch"

    print("KERNEL_OK")
</pallas_src>

<mosaic_0001>
module attributes {stable_mosaic.version = 11 : i64} {
  func.func @_attention_kernel(%arg0: i32, %arg1: i32, %arg2: memref<1x8x32xf32, #tpu.memory_space<vmem>>, %arg3: memref<1x32x48xf32, #tpu.memory_space<vmem>>, %arg4: memref<1x16x32xf32, #tpu.memory_space<vmem>>, %arg5: memref<1x32xf32, #tpu.memory_space<vmem>>, %arg6: memref<1x8x32xf32, #tpu.memory_space<vmem>>, %arg7: memref<1x1x8x8xf32, #tpu.memory_space<vmem>>, %arg8: memref<8x32xf32, #tpu.memory_space<vmem>>) attributes {dimension_semantics = [#tpu.dimension_semantics<parallel>, #tpu.dimension_semantics<arbitrary>], iteration_bounds = array<i64: 2, 4>, scalar_prefetch = 0 : i64, scratch_operands = 1 : i64, tpu.core_type = #tpu.core_type<tc>, window_params = [{transform_indices = @transform_0, window_bounds = array<i64: 1, 8, 32>}, {transform_indices = @transform_1, window_bounds = array<i64: 1, 32, 48>}, {transform_indices = @transform_2, window_bounds = array<i64: 1, 16, 32>}, {pipeline_mode = #tpu.pipeline_mode<synchronous>, transform_indices = @transform_3, window_bounds = array<i64: 1, 32>}, {transform_indices = @transform_4, window_bounds = array<i64: 1, 8, 32>}, {transform_indices = @transform_5, window_bounds = array<i64: 1, 1, 8, 8>}]} {
    %c0 = arith.constant 0 : index
    %c0_0 = arith.constant 0 : index
    %c0_1 = arith.constant 0 : index
    %0 = vector.load %arg2[%c0, %c0_0, %c0_1] : memref<1x8x32xf32, #tpu.memory_space<vmem>>, vector<1x8x32xf32>
    %1 = vector.shape_cast %0 : vector<1x8x32xf32> to vector<8x32xf32>
    %c0_2 = arith.constant 0 : index
    %c0_3 = arith.constant 0 : index
    %c0_4 = arith.constant 0 : index
    %2 = vector.load %arg3[%c0_2, %c0_3, %c0_4] : memref<1x32x48xf32, #tpu.memory_space<vmem>>, vector<1x32x48xf32>
    %3 = vector.shape_cast %2 : vector<1x32x48xf32> to vector<32x48xf32>
    %cst = arith.constant dense<0.000000e+00> : vector<8x48xf32>
    %4 = tpu.matmul %1, %3, %cst {dimension_numbers = #tpu.dot_dimension_numbers<[1], [0], [0], [1], [0, 0, 1, 1], [], []>} : vector<8x32xf32>, vector<32x48xf32>, vector<8x48xf32> -> vector<8x48xf32>
    %5 = vector.extract_strided_slice %4 {offsets = [0, 0], sizes = [8, 16], strides = [1, 1]} : vector<8x48xf32> to vector<8x16xf32>
    %cst_5 = arith.constant 2.500000e-01 : f32
    %6 = vector.broadcast %cst_5 : f32 to vector<8x16xf32>
    %7 = arith.mulf %5, %6 : vector<8x16xf32>
    %8 = vector.extract_strided_slice %4 {offsets = [0, 16], sizes = [8, 16], strides = [1, 1]} : vector<8x48xf32> to vector<8x16xf32>
    %9 = vector.extract_strided_slice %4 {offsets = [0, 32], sizes = [8, 16], strides = [1, 1]} : vector<8x48xf32> to vector<8x16xf32>
    %cst_6 = arith.constant dense<0.000000e+00> : vector<8x8xf32>
    %10 = tpu.matmul %7, %8, %cst_6 {dimension_numbers = #tpu.dot_dimension_numbers<[1], [1], [0], [0], [0, 0, 1, 0], [], []>} : vector<8x16xf32>, vector<8x16xf32>, vector<8x8xf32> -> vector<8x8xf32>
    %cst_7 = arith.constant dense<0xFF800000> : vector<8xf32>
    %11 = vector.multi_reduction <maximumf>, %10, %cst_7 [1] : vector<8x8xf32> to vector<8xf32>
    %12 = vector.shape_cast %11 : vector<8xf32> to vector<8x1xf32>
    %13 = vector.broadcast %12 : vector<8x1xf32> to vector<8x8xf32>
    %14 = arith.subf %10, %13 : vector<8x8xf32>
    %15 = math.exp %14 : vector<8x8xf32>
    %cst_8 = arith.constant dense<0.000000e+00> : vector<8xf32>
    %16 = vector.multi_reduction <add>, %15, %cst_8 [1] : vector<8x8xf32> to vector<8xf32>
    %17 = vector.shape_cast %16 : vector<8xf32> to vector<8x1xf32>
    %18 = vector.broadcast %17 : vector<8x1xf32> to vector<8x8xf32>
    %19 = arith.divf %15, %18 : vector<8x8xf32>
    %c0_9 = arith.constant 0 : index
    %c0_10 = arith.constant 0 : index
    %c0_11 = arith.constant 0 : index
    %c0_12 = arith.constant 0 : index
    %20 = vector.load %arg7[%c0_9, %c0_10, %c0_11, %c0_12] : memref<1x1x8x8xf32, #tpu.memory_space<vmem>>, vector<1x1x8x8xf32>
    %21 = vector.shape_cast %20 : vector<1x1x8x8xf32> to vector<8x8xf32>
    %22 = vector.shape_cast %19 : vector<8x8xf32> to vector<1x1x8x8xf32>
    tpu.vector_store %arg7[%c0_9, %c0_10, %c0_11, %c0_12], %22 {strides = array<i32>} : memref<1x1x8x8xf32, #tpu.memory_space<vmem>>, vector<1x1x8x8xf32>,
    %cst_13 = arith.constant dense<0.000000e+00> : vector<8x16xf32>
    %23 = tpu.matmul %19, %9, %cst_13 {dimension_numbers = #tpu.dot_dimension_numbers<[1], [0], [0], [1], [0, 0, 1, 1], [], []>} : vector<8x8xf32>, vector<8x16xf32>, vector<8x16xf32> -> vector<8x16xf32>
    %c0_14 = arith.constant 0 : index
    %c0_15 = arith.constant 0 : index
    %c0_16 = arith.constant 0 : index
    %24 = vector.load %arg4[%c0_14, %c0_15, %c0_16] : memref<1x16x32xf32, #tpu.memory_space<vmem>>, vector<1x16x32xf32>
    %25 = vector.shape_cast %24 : vector<1x16x32xf32> to vector<16x32xf32>
    %cst_17 = arith.constant dense<0.000000e+00> : vector<8x32xf32>
    %26 = tpu.matmul %23, %25, %cst_17 {dimension_numbers = #tpu.dot_dimension_numbers<[1], [0], [0], [1], [0, 0, 1, 1], [], []>} : vector<8x16xf32>, vector<16x32xf32>, vector<8x32xf32> -> vector<8x32xf32>
    %c0_i32 = arith.constant 0 : i32
    %27 = arith.cmpi eq, %arg1, %c0_i32 : i32
    %28 = arith.extui %27 : i1 to i32
    %c0_i32_18 = arith.constant 0 : i32
    %29 = arith.cmpi ne, %28, %c0_i32_18 : i32
    scf.if %29 {
      %cst_24 = arith.constant 0.000000e+00 : f32
      %36 = vector.broadcast %cst_24 : f32 to vector<8x32xf32>
      %c0_25 = arith.constant 0 : index
      %c0_26 = arith.constant 0 : index
      %37 = vector.load %arg8[%c0_25, %c0_26] : memref<8x32xf32, #tpu.memory_space<vmem>>, vector<8x32xf32>
      tpu.vector_store %arg8[%c0_25, %c0_26], %36 {strides = array<i32>} : memref<8x32xf32, #tpu.memory_space<vmem>>, vector<8x32xf32>,
    } else {
    }
    %c0_19 = arith.constant 0 : index
    %c0_20 = arith.constant 0 : index
    %30 = vector.load %arg8[%c0_19, %c0_20] : memref<8x32xf32, #tpu.memory_space<vmem>>, vector<8x32xf32>
    %31 = arith.addf %30, %26 : vector<8x32xf32>
    %c0_21 = arith.constant 0 : index
    %c0_22 = arith.constant 0 : index
    %32 = vector.load %arg8[%c0_21, %c0_22] : memref<8x32xf32, #tpu.memory_space<vmem>>, vector<8x32xf32>
    tpu.vector_store %arg8[%c0_21, %c0_22], %31 {strides = array<i32>} : memref<8x32xf32, #tpu.memory_space<vmem>>, vector<8x32xf32>,
    %c3_i32 = arith.constant 3 : i32
    %33 = arith.cmpi eq, %arg1, %c3_i32 : i32
    %34 = arith.extui %33 : i1 to i32
    %c0_i32_23 = arith.constant 0 : i32
    %35 = arith.cmpi ne, %34, %c0_i32_23 : i32
    scf.if %35 {
      %c0_24 = arith.constant 0 : index
      %c0_25 = arith.constant 0 : index
      %36 = vector.load %arg8[%c0_24, %c0_25] : memref<8x32xf32, #tpu.memory_space<vmem>>, vector<8x32xf32>
      %c0_26 = arith.constant 0 : index
      %c0_27 = arith.constant 0 : index
      %37 = vector.load %arg5[%c0_26, %c0_27] : memref<1x32xf32, #tpu.memory_space<vmem>>, vector<1x32xf32>
      %38 = vector.broadcast %37 : vector<1x32xf32> to vector<8x32xf32>
      %39 = arith.addf %36, %38 : vector<8x32xf32>
      %c0_28 = arith.constant 0 : index
      %c0_29 = arith.constant 0 : index
      %c0_30 = arith.constant 0 : index
      %40 = vector.load %arg6[%c0_28, %c0_29, %c0_30] : memref<1x8x32xf32, #tpu.memory_space<vmem>>, vector<1x8x32xf32>
      %41 = vector.shape_cast %40 : vector<1x8x32xf32> to vector<8x32xf32>
      %42 = vector.shape_cast %39 : vector<8x32xf32> to vector<1x8x32xf32>
      tpu.vector_store %arg6[%c0_28, %c0_29, %c0_30], %42 {strides = array<i32>} : memref<1x8x32xf32, #tpu.memory_space<vmem>>, vector<1x8x32xf32>,
    } else {
    }
    return
  }
  func.func @transform_0(%arg0: i32, %arg1: i32) -> (i32, i32, i32) {
    %c0_i32 = arith.constant 0 : i32
    %c0_i32_0 = arith.constant 0 : i32
    %c0_i32_1 = arith.constant 0 : i32
    return %arg0, %c0_i32, %c0_i32_0 : i32, i32, i32
  }
  func.func @transform_1(%arg0: i32, %arg1: i32) -> (i32, i32, i32) {
    %c0_i32 = arith.constant 0 : i32
    %c0_i32_0 = arith.constant 0 : i32
    %c0_i32_1 = arith.constant 0 : i32
    return %arg1, %c0_i32, %c0_i32_0 : i32, i32, i32
  }
  func.func @transform_2(%arg0: i32, %arg1: i32) -> (i32, i32, i32) {
    %c0_i32 = arith.constant 0 : i32
    %c0_i32_0 = arith.constant 0 : i32
    %c0_i32_1 = arith.constant 0 : i32
    return %arg1, %c0_i32, %c0_i32_0 : i32, i32, i32
  }
  func.func @transform_3(%arg0: i32, %arg1: i32) -> (i32, i32) {
    %c0_i32 = arith.constant 0 : i32
    %c0_i32_0 = arith.constant 0 : i32
    %c0_i32_1 = arith.constant 0 : i32
    return %c0_i32, %c0_i32_0 : i32, i32
  }
  func.func @transform_4(%arg0: i32, %arg1: i32) -> (i32, i32, i32) {
    %c0_i32 = arith.constant 0 : i32
    %c0_i32_0 = arith.constant 0 : i32
    %c0_i32_1 = arith.constant 0 : i32
    return %arg0, %c0_i32, %c0_i32_0 : i32, i32, i32
  }
  func.func @transform_5(%arg0: i32, %arg1: i32) -> (i32, i32, i32, i32) {
    %c0_i32 = arith.constant 0 : i32
    %c0_i32_0 = arith.constant 0 : i32
    %c0_i32_1 = arith.constant 0 : i32
    return %arg0, %arg1, %c0_i32, %c0_i32_0 : i32, i32, i32, i32
  }
}

</mosaic_0001>

<bundles_post_ra>
// kernel: attention_forward.1
= control target key start
LH: loop header
LB: loop body
LE: loop exit
PB: predicated region body
PF: predicated region fallthrough
CT: control target
= control target key end

     0   :  { %s1167_s0 = inlined_call_operand.vmem [shape: f32[2,8,32], index: 0, kind: input, shape index: {}]   ;;  %s1168_s1 = inlined_call_operand.vmem [shape: f32[4,32,48], index: 1, kind: input, shape index: {}]   ;;  %s1169_s2 = inlined_call_operand.vmem [shape: f32[4,16,32], index: 2, kind: input, shape index: {}]   ;;  %s1170_s3 = inlined_call_operand.vmem [shape: f32[1,32], index: 3, kind: input, shape index: {}]   ;;  %s1171_s4 = inlined_call_operand.hbm [shape: f32[2,8,32], index: 4, kind: output, shape index: {0}]   ;;  %s1172_s5 = inlined_call_operand.hbm [shape: f32[2,4,8,8], index: 5, kind: output, shape index: {1}]  }
   0x1   :  { %1181 = sst [smem:[#allocation15_spill]] %s1167_s0 }
   0x2   :  { %1182 = sst [smem:[#allocation16_spill]] %s1168_s1 }
   0x3   :  { %1183 = sst [smem:[#allocation17_spill]] %s1169_s2 }
   0x4   :  { %1184 = sst [smem:[#allocation18_spill]] %s1170_s3 }
   0x5   :  { %11 = vsyncpa [#allocation4], 0 }
   0x6   :  { %13 = vsyncpa [#allocation4 + $0x1], 0 }
   0x7   :  { %14 = vsyncpa [#allocation6], 0 }
   0x8   :  { %16 = vsyncpa [#allocation6 + $0x1], 0  ;;  %s927_s18 = smov 0   ;;  %s929_s19 = smov 0  }
   0x9   :  { %s931_s20 = smov 0   ;;  %s933_s21 = smov 0  }
   0xa   :  { %s935_s22 = smov 0   ;;  %s937_s23 = smov 0  }
   0xb   :  { %s939_s24 = smov 0   ;;  %s941_s25 = smov 0  }
   0xc   :  { %s943_s26 = smov 0   ;;  %s945_s27 = smov 0  }
   0xd   :  { %s947_s28 = smov 0  }
   0xe LB: > { %1185 = sst [smem:[#allocation9_spill]] %s872_s23  ;;  %s606_s29 = sadd.s32 4294967295, %s892_s28   ;;  %s892_s28 = sphi %s947_s28, %s22_s28   ;;  %s888_s27 = sphi %s945_s27, %s1209_s27   ;;  %s884_s26 = sphi %s943_s26, %s1208_s26   ;;  %s880_s25 = sphi %s941_s25, %s1207_s25   ;;  %s876_s24 = sphi %s939_s24, %s1206_s24   ;;  %s872_s23 = sphi %s937_s23, %s1205_s23   ;;  %s868_s22 = sphi %s935_s22, %s1214_s22   ;;  %s864_s21 = sphi %s933_s21, %s1213_s21   ;;  %s860_s20 = sphi %s931_s20, %s1212_s20   ;;  %s856_s19 = sphi %s929_s19, %s1211_s19   ;;  %s852_s18 = sphi %s927_s18, %s1210_s18  }
   0xf   : > { %1186 = sst [smem:[#allocation10_spill]] %s884_s26  ;;  %s607_s30 = sadd.s32 4294967294, %s892_s28  }
  0x10   : > { %1187 = sst [smem:[#allocation11_spill]] %s888_s27  ;;  %s31_s6 = sadd.s32 1, %s884_s26 }
  0x11   : > { %s34_s7 = sadd.s32 1, %s888_s27  ;;  %p32_p0 = scmp.ge.s32.totalorder %s31_s6, 4 }
  0x12   : > { %s140_s8 = sadd.s32 1, %s872_s23  ;;  %p150_p1 = scmp.ne.s32.totalorder %s872_s23, %s868_s22 }
  0x13   : > { %p989_p2 = scmp.eq.s32.totalorder %s606_s29, 7  ;;  %s1216_s6 = smov (%p32_p0, %s31_s6), 0 }
  0x14   : > { %1189 = sst [smem:[#allocation12_spill]] %s1216_s6  ;;  %s1218_s7 = smov (!%p32_p0, %s34_s7), %s888_s27 }
  0x15   : > { %p998_p3 = por %p989_p2, %p150_p1  ;;  %p156_p4 = scmp.ne.s32.totalorder %s868_s22, %s864_s21 }
  0x16   : > { %p36_p5 = scmp.ge.s32.totalorder %s1218_s7, 2  ;;  %p1004_p6 = scmp.eq.s32.totalorder %s607_s30, 7 }
  0x17   : > { %s164_s12 = ssub.s32 %s884_s26, %s1216_s6  ;;  %s168_s13 = sadd.s32 1, %s860_s20 }
  0x18   : > { %s1220_s7 = smov (%p36_p5, %s1218_s7), 0  ;;  %p1015_p7 = por %p1004_p6, %p156_p4 }
  0x19   : > { %1192 = sst [smem:[#allocation13_spill]] %s1220_s7  ;;  %p178_p8 = scmp.ne.s32.totalorder %s860_s20, %s856_s19 }
  0x1a   : > { %s137_s15 = ssub.s32 %s888_s27, %s1220_s7  ;;  %p184_p9 = scmp.ne.s32.totalorder %s856_s19, %s852_s18 }
  0x1b   : > { %p138_p10 = scmp.eq.s32.totalorder %s137_s15, 0  ;;  %s165_s16 = sor.u32 %s164_s12, %s137_s15 }
  0x1c   : > { %p166_p11 = scmp.eq.s32.totalorder %s165_s16, 0  ;;  %p1027_p12 = por %p178_p8, %p989_p2 }
  0x1d   : > { %s1032_s29 = scalar_select %p138_p10, %s872_s23, %s140_s8  }
  0x1e   : > { %s1035_s30 = scalar_select %p166_p11, %s860_s20, %s168_s13  }
  0x1f   : > { %1195 = sst [smem:[#allocation14_spill]] %s1032_s29  ;;  %p1039_p13 = por %p184_p9, %p1004_p6 }
  0x20   : > { %p610_p0 = scmp.ge.s32.totalorder %s892_s28, 1  ;;  %p229_p1 = scmp.lt.s32.totalorder %s892_s28, 9 }
  0x22   : > { %p230_p4 = pnand %p610_p0, %p229_p1 }
  0x23   : > { %s1177_s9 = sand.u32 (!%p230_p4), 1, %s868_s22   ;;  %p275_p2 = scmp.lt.s32.totalorder (!%p230_p4), %s876_s24, 3 }
  0x24   : > { %233 = sbr.rel (%p230_p4) target bundleno = 1011 (0x3f3), region = 36  ;;  %s1049_s8 = sshll.u32 (!%p230_p4), %s1177_s9, 3 }
  0x25   : > { %p271_p5 = scmp.lt.s32.totalorder (!%p230_p4), %s880_s25, 1  ;;  %s1197_s1 = sld [smem:[#allocation16_spill]] (!%p230_p4) }
  0x26   : > { %s1198_s0 = sld [smem:[#allocation15_spill]] (!%p230_p4)  ;;  %s894_s15 = smov (!%p230_p4), 112  }
  0x27   : > { %s895_s26 = smov (!%p230_p4), 96   ;;  %s1199_s2 = sld [smem:[#allocation17_spill]] (!%p230_p4) }
  0x28   : > { %s263_s16 = scalar_lea.vmem (!%p230_p4), [#allocation3], %s1049_s8  ;;  %p623_p6 = scmp.ne.s32.totalorder (!%p230_p4), %s876_s24, 0 }
  0x29   : > { %s1053_s11 = scalar_select %p275_p2, %s876_s24, 3  ;;  %vm290_vm0 = vcmask 261120   ;;  %vm318_vm1 = vcmask 130048   ;;  %vm344_vm2 = vcmask 64512  }
  0x2a   : > { %s272_s12 = scalar_select %p271_p5, %s880_s25, 1 }
  0x2b   : > { %s632_s13 = sshll.u32 %s1053_s11, 5 }
  0x2c   : > { %s279_s7 = scalar_lea.vmem %s1197_s1, %s632_s13  ;;  %s613_s27 = sshll.u32 %s272_s12, 3 }
  0x2d   : > { %v289_v0 = vld [vmem:[%s279_s7 + $0x18] sm:$0xff]  ;;  %v288_v1 = vld [vmem:[%s279_s7 + $0x10] sm:$0xff]  ;;  %v287_v2 = vld [vmem:[%s279_s7 + $0x8] sm:$0xff]  ;;  %s274_s9 = scalar_lea.vmem %s1198_s0, %s613_s27  ;;  %s633_s27 = sshll.u32 %s1053_s11, 4 }
  0x2e   : > { %306 = vmatpush.msra.mxu0 %v289_v0  ;;  %v286_v3 = vld [vmem:[%s279_s7] sm:$0xff]  ;;  %s1178_s12 = sand.u32 1, %s856_s19  }
  0x2f   : > { %v285_v4 = vld [vmem:[%s274_s9] sm:$0xff]  ;;  %s284_s9 = scalar_lea.vmem %s1199_s2, %s633_s27  ;;  %s1075_s13 = sshll.u32 %s1178_s12, 3 }
  0x30   : > { %307 = vmatpush.msra.mxu0 %v288_v1  ;;  %v397_v15 = vld [vmem:[%s284_s9 + $0x8] sm:$0xff]  ;;  %s1179_s11 = scalar_lea.vmem [#allocation5], %s1075_s13  ;;  %v396_v29 = vld [vmem:[%s284_s9] sm:$0xff] }
  0x31   : > { %415 = vmatpush.msra.mxu3 %v397_v15 }
  0x32   : > { %308 = vmatpush.msra.mxu0 %v287_v2 }
  0x33   : > { %416 = vmatpush.msra.mxu3 %v396_v29 }
  0x34   : > { %309 = vmatpush.msra.mxu0 %v286_v3 }
  0x35   : > { %618 = vmatmul.msk.f32.vlgmr.msra.gmra.mxu0 %vm290_vm0, %v285_v4 }
  0xb2   : > { %v311_v5 = vpop.f32.mrf.mxu0 }
  0xb3   : > { %316 = vrot.lane.b32.xlu0 %v311_v5, %s894_s15  ;;  %v314_v7 = vmul.f32 0.25, %v311_v5 }
 0x125   : > { %v317_v6 = vpop.permute.xlu0 %316 }
 0x126   : > { %619 = vmatpush.xpose.msk.msra.mxu1 %vm318_vm1, %v317_v6 }
 0x129   : > { %620 = vmatmul.msk.f32.vlgmr.msra.gmra.mxu1 %vm318_vm1, %v314_v7 }
 0x1a6   : > { %v341_v8 = vpop.f32.mrf.mxu1 }
 0x1a7   : > { %v345_v9 = vsel %vm344_vm2, %v341_v8, -inf }
 0x1a8   : > { %346 = vmax.xlane.f32.xlu0 %v345_v9 }
 0x21b   : > { %v347_v10 = vpop.xlane.xlu0 %346 }
 0x21c   : > { %v348_v11 = vsub.f32 %v341_v8, %v347_v10 }
 0x21e   : > { %v349_v12 = vmul.f32 1.442695, %v348_v11 }
 0x220   : > { %737 = vpow2.f32 %v349_v12 }
 0x226   : > { %v738_v13 = vpop.eup %737 }
 0x227   : > { %v351_v14 = vsel %vm344_vm2, %v738_v13, 0.0 }
 0x228   : > { %352 = vadd.xlane.f32.xlu1 %v351_v14 }
 0x241   : > { %370 = vrot.lane.b32.xlu1 %v311_v5, %s895_s26 }
 0x29b   : > { %v353_v16 = vpop.xlane.xlu1 %352 }
 0x29c   : > { %739 = vrcp.f32 %v353_v16  ;;  %v365_v20 = vand.u32 2147483648, %v353_v16  ;;  %v363_v22 = vand.u32 2147483647, %v353_v16  ;;  %vm359_vm4 = vweird.f32 %v353_v16 }
 0x29e   : > { %v366_v24 = vor.u32 1.1754944e-38, %v365_v20  ;;  %vm364_vm6 = vcmp.eq.f32.partialorder %v363_v22, 8.507059e+37 }
 0x2a2   : > { %v740_v17 = vpop.eup %739 }
 0x2a3   : > { %v355_v18 = vmul.f32 %v740_v17, %v353_v16  ;;  %vm360_vm3 = vweird.f32 %v740_v17 }
 0x2a4   : > { %vm361_vm5 = vmor %vm359_vm4, %vm360_vm3 }
 0x2a5   : > { %v356_v19 = vsub.f32 1.0, %v355_v18 }
 0x2a7   : > { %v357_v21 = vmul.f32 %v740_v17, %v356_v19 }
 0x2a9   : > { %v358_v23 = vadd.f32 %v740_v17, %v357_v21 }
 0x2ab   : > { %v362_v25 = vsel %vm361_vm5, %v740_v17, %v358_v23 }
 0x2ac   : > { %v367_v26 = vsel %vm364_vm6, %v366_v24, %v362_v25 }
 0x2ad   : > { %v368_v27 = vmul.f32 %v738_v13, %v367_v26 }
 0x2af   : > { %369 = vst.msk [vmem:[%s1179_s11] sm:$0xff] %vm344_vm2, %v368_v27 }
 0x2b3   : > { %v371_v28 = vpop.permute.xlu1 %370 }
 0x2b4   : > { %391 = vmatpush.msra.mxu2 %v371_v28 }
 0x2b5   : > { %621 = vmatmul.msk.f32.vlgmr.msra.gmra.mxu2 %vm344_vm2, %v368_v27 }
 0x338   : > { %v393_v30 = vpop.f32.mrf.mxu2 }
 0x339   : > { %622 = vmatmul.msk.f32.vlgmr.msra.gmra.mxu3 %vm318_vm1, %v393_v30 }
 0x3b8   : > { %424 = sbr.rel (%p623_p6) target bundleno = 959 (0x3bf), region = 40 }
 0x3bc   : > { %v418_v31 = vpop.f32.mrf.mxu3 }
 0x3bd   : > { %v896_v32 = vmov 0.0  }
 0x3be   : > { %425 = vst.msk [vmem:[#allocation2] sm:$0xff] %vm290_vm0, %v896_v32 }
 0x3bf PF: > { %p624_p8 = scmp.ne.s32.totalorder %s876_s24, 3 }
 0x3c0   : > { %s1200_s3 = sld [smem:[#allocation18_spill]] (!%p624_p8) }
 0x3c4   : > { %432 = sbr.rel (%p624_p8) target bundleno = 979 (0x3d3), region = 44 }
 0x3c5   : > { %v426_v33 = vld [vmem:[#allocation2] sm:$0xff] }
 0x3c6   : > { %v427_v34 = vadd.f32 %v426_v33, %v418_v31 }
 0x3c8   : > { %428 = vst.msk [vmem:[#allocation2] sm:$0xff] %vm290_vm0, %v427_v34 }
 0x3c9   : > { %v741_v36 = vld [vmem:[%s1200_s3] ss:$0 sm:$0xff] }
 0x3cf   : > { %v433_v35 = vld [vmem:[#allocation2] sm:$0xff] }
 0x3d0   : > { %v438_v37 = vadd.f32 %v741_v36, %v433_v35 }
 0x3d2   : > { %439 = vst.msk [vmem:[%s263_s16] sm:$0xff] %vm290_vm0, %v438_v37 }
 0x3d3 PF: > { %s627_s8 = sshll.u32 %s880_s25, 3  ;;  %s458_s9 = sshll.u32 %s263_s16, 4  ;;  %s459_s9 = int_to_ptr.vmem [resolvable:$true] %s458_s9 }
 0x3d4   : > { %s456_s29 = scalar_lea.hbm %s1171_s4, %s627_s8  ;;  %s1201_s11 = sand.u32 1, %s868_s22  }
 0x3d5   : > { %s460_s12 = sshll.u32 %s456_s29, 4  ;;  %s441_s0 = scalar_lea.sflag [#allocation4], %s1201_s11  ;;  %s461_s12 = int_to_ptr.hbm [resolvable:$true] %s460_s12 }
 0x3d6   : > { %s756_s15 = sshra.s32 %s461_s12, 4  ;;  %s762_s3 = scalar_lea.hbm %s1171_s4, 16  ;;  %s757_s15 = int_to_ptr.hbm [resolvable:$true] %s756_s15 }
 0x3d7   : > { %s758_s26 = scalar_lea.hbm %s757_s15, 8  ;;  %p763_p0 = scmp.lt.s32.totalorder %s757_s15, %s1171_s4 }
 0x3d8   : > { %p759_p9 = scmp.ne.s32.totalorder %s757_s15, %s758_s26  ;;  %p764_p1 = scmp.lt.s32.totalorder %s762_s3, %s758_s26 }
 0x3da   : > { %p760_p10 = pnand %p759_p9, %p998_p3  ;;  %p765_p4 = por %p764_p1, %p763_p0 }
 0x3dc   : > { %p761_p11 = pneg %p760_p10 }
 0x3de   : > { %p766_p2 = pnand %p765_p4, %p761_p11 }
 0x3e0   : > { %769 = shalt.err (!%p766_p2)
}
 0x3e1   : > { %634 = dma.vmem_to_hbm [thread:$0]  (%p998_p3), %s459_s9, 128, %s461_s12, %s441_s0  }
 0x3e2   : > { %s628_s11 = sshll.u32 %s880_s25, 2  ;;  %s1202_s16 = scalar_lea.vmem [#allocation5], %s1075_s13 }
 0x3e3   : > { %s474_s1 = sshll.u32 %s1202_s16, 4  ;;  %s470_s2 = sadd.s32 %s876_s24, %s628_s11  ;;  %s475_s1 = int_to_ptr.vmem [resolvable:$true] %s474_s1 }
 0x3e4   : > { %s629_s8 = sshll.u32 %s470_s2, 3  ;;  %s1203_s15 = sand.u32 1, %s856_s19  }
 0x3e5   : > { %s472_s3 = scalar_lea.hbm %s1172_s5, %s629_s8  ;;  %s446_s10 = scalar_lea.sflag [#allocation6], %s1203_s15 }
 0x3e6   : > { %s476_s29 = sshll.u32 %s472_s3, 4  ;;  %s790_s24 = scalar_lea.hbm %s1172_s5, 64  ;;  %s477_s29 = int_to_ptr.hbm [resolvable:$true] %s476_s29 }
 0x3e7   : > { %s784_s26 = sshra.s32 %s477_s29, 4  ;;  %s785_s26 = int_to_ptr.hbm [resolvable:$true] %s784_s26 }
 0x3e8   : > { %s786_s27 = scalar_lea.hbm %s785_s26, 8  ;;  %p791_p8 = scmp.lt.s32.totalorder %s785_s26, %s1172_s5 }
 0x3e9   : > { %p787_p5 = scmp.ne.s32.totalorder %s785_s26, %s786_s27  ;;  %p792_p9 = scmp.lt.s32.totalorder %s790_s24, %s786_s27 }
 0x3eb   : > { %p788_p3 = pnand %p787_p5, %p1027_p12  ;;  %p793_p10 = por %p792_p9, %p791_p8 }
 0x3ed   : > { %p789_p6 = pneg %p788_p3 }
 0x3ef   : > { %p794_p11 = pnand %p793_p10, %p789_p6 }
 0x3f1   : > { %797 = shalt.err (!%p794_p11)
}
 0x3f2   : > { %635 = dma.vmem_to_hbm [thread:$0]  (%p1027_p12), %s475_s1, 128, %s477_s29, %s446_s10  }
 0x3f3 PF: > { %p645_p0 = scmp.ge.s32.totalorder %s892_s28, 2  ;;  %s488_s9 = sand.u32 1, %s864_s21  }
 0x3f4   : > { %s489_s11 = scalar_lea.sflag [#allocation4], %s488_s9 }
 0x3f5   : > { %p639_p1 = pnand %p645_p0, %p1015_p7 }
 0x3f7   : > { %p640_p4 = pneg %p639_p1 }
 0x3f9   : > { %843 = dma.done.wait (%p640_p4), %s489_s11, 128  }
 0x3fa   : > { %845 = vsyncadd (%p640_p4), %s489_s11, 4294967168  ;;  %s498_s16 = sand.u32 1, %s852_s18   ;;  %p642_p2 = pnand %p645_p0, %p1039_p13 }
 0x3fb   : > { %s499_s17 = scalar_lea.sflag [#allocation6], %s498_s16 }
 0x3fc   : > { %p643_p5 = pneg %p642_p2 }
 0x3fe   : > { %847 = dma.done.wait (%p643_p5), %s499_s17, 128  }
 0x3ff   : > { %849 = vsyncadd (%p643_p5), %s499_s17, 4294967168  ;;  %s22_s28 = sadd.s32 1, %s892_s28   ;;  %s1204_s14 = sld [smem:[#allocation9_spill]] }
 0x400   : > { %p19_p12 = scmp.ge.s32.totalorder %s22_s28, 10   ;;  %s1205_s23 = sld [smem:[#allocation14_spill]] }
 0x401   : > { %s1206_s24 = sld [smem:[#allocation10_spill]]  ;;  %s1210_s18 = smov %s856_s19 }
 0x402   : > { %s1207_s25 = sld [smem:[#allocation11_spill]]  ;;  %s1211_s19 = smov %s860_s20 }
 0x403   : > { %s1208_s26 = sld [smem:[#allocation12_spill]]  ;;  %s1212_s20 = smov %s1035_s30 }
 0x404   : > { %s1209_s27 = sld [smem:[#allocation13_spill]]  ;;  %s1213_s21 = smov %s868_s22 }
 0x405   : > { %s1214_s22 = smov %s1204_s14  ;;  %21 = sbr.rel (!%p19_p12) target bundleno = 14 (0xe), region = 102 }
 0x40a   :  { %505 = vsyncpa [#allocation4], 1 }
 0x40b   :  { %507 = vsyncpa [#allocation4 + $0x1], 1 }
 0x40c   :  { %508 = vsyncpa [#allocation6], 1 }
 0x40d   :  { %510 = vsyncpa [#allocation6 + $0x1], 1 }

</bundles_post_ra>
